<compile_context>
chip_gen: v7x
topology: tpu7x:2x2x1
jax: 0.10.0
libtpu: 0.0.40
codegen_flags: <defaults>
</compile_context>

<pallas_src>
import jax
import jax.numpy as jnp
import numpy as np
from jax.experimental import pallas as pl
from jax.experimental.pallas import tpu as pltpu


def _round_up(n, m):
    return (n + m - 1) // m * m


def _cdiv(a, b):
    return -(-a // b)


# --------------------------------------------------------------------------
# Kernels
# --------------------------------------------------------------------------
def _decoder_fused_kernel(x_ref, w1_ref, b1_ref, w2_ref, b2_ref, o_ref):
    # fc1 + bias + ReLU, f32 accumulation on the MXU.
    h = jnp.dot(x_ref[...], w1_ref[...], preferred_element_type=jnp.float32)
    h = jnp.maximum(h + b1_ref[...], 0.0)
    # fc2 + bias; activation kept in the input dtype (f32 stays f32; bf16 takes
    # the native bf16 MXU path).
    y = jnp.dot(h.astype(x_ref.dtype), w2_ref[...],
                preferred_element_type=jnp.float32)
    o_ref[...] = (y + b2_ref[...]).astype(o_ref.dtype)


def _decoder_coltiled_kernel(x_ref, w1_ref, b1_ref, w2_ref, b2_ref, o_ref, h_ref):
    # Output-column-tiled variant (large w2 / v7x 64 MiB VMEM).  The hidden
    # activation is computed once per batch tile (j == 0) and reused across
    # all output-column tiles from a VMEM scratch.
    @pl.when(pl.program_id(1) == 0)
    def _():
        h = jnp.dot(x_ref[...], w1_ref[...], preferred_element_type=jnp.float32)
        h_ref[...] = jnp.maximum(h + b1_ref[...], 0.0)

    y = jnp.dot(h_ref[...].astype(x_ref.dtype), w2_ref[...],
                preferred_element_type=jnp.float32)
    o_ref[...] = (y + b2_ref[...]).astype(o_ref.dtype)


# --------------------------------------------------------------------------
# Wrapper
# --------------------------------------------------------------------------
def _const_spec(shape, index_map, *, single_buffer):
    """BlockSpec for grid-invariant operands; single-buffered when supported."""
    if single_buffer:
        try:
            return pl.BlockSpec(shape, index_map, pipeline_mode=pl.Buffered(1))
        except TypeError:
            pass  # older jax without pipeline_mode -> default double buffering
    return pl.BlockSpec(shape, index_map)


def decoder_forward(x, w1, b1, w2, b2, *,
                    batch_tile=512,
                    out_tile=512,
                    min_batch_tiles=2,
                    weight_vmem_budget=32 * 1024 * 1024,
                    single_buffer_weights=True):
    """y = relu(x @ w1 + b1) @ w2 + b2  (weights stored (in, out))."""
    B, L = x.shape
    H = w1.shape[1]
    O = w2.shape[1]
    assert w1.shape == (L, H) and b1.shape == (H,)
    assert w2.shape == (H, O) and b2.shape == (O,)

    b1_2d = b1.reshape(1, H)
    b2_2d = b2.reshape(1, O)

    def nbytes(a):
        return a.size * jnp.dtype(a.dtype).itemsize

    # ---- batch tiling: minimal padding, >=2 tiles when possible (v7x 2 TCs).
    sub = 8 * max(1, 4 // jnp.dtype(x.dtype).itemsize)   # 8 f32 / 16 bf16 rows
    n_bt = max(1, _cdiv(B, batch_tile))
    if B >= 2 * sub and n_bt < min_batch_tiles:
        n_bt = min_batch_tiles
    TB = _round_up(_cdiv(B, n_bt), sub)
    if TB >= B:
        TB = B            # single full-dim tile (legal for any B)
    grid_b = _cdiv(B, TB)  # trailing partial block handled by Pallas masking

    weight_bytes = nbytes(w1) + nbytes(b1) + nbytes(w2) + nbytes(b2)
    cost = pl.CostEstimate(
        flops=2 * B * (L * H + H * O),
        transcendentals=0,
        bytes_accessed=nbytes(x) + weight_bytes
        + B * O * jnp.dtype(x.dtype).itemsize,
    )

    def vmem_params(need_bytes, semantics):
        limit = int(min(max(need_bytes * 5 // 4 + (4 << 20), 32 << 20), 128 << 20))
        return pltpu.CompilerParams(dimension_semantics=semantics,
                                    vmem_limit_bytes=limit)

    itm = jnp.dtype(x.dtype).itemsize

    # -------------------- path A: fully VMEM-resident weights ---------------
    def run_fused(single_buffer):
        need = (weight_bytes * (1 if single_buffer else 2)
                + 2 * TB * L * itm          # x tile, double buffered
                + 2 * TB * O * itm          # out tile, double buffered
                + 4 * TB * H)               # f32 hidden
        return pl.pallas_call(
            _decoder_fused_kernel,
            out_shape=jax.ShapeDtypeStruct((B, O), x.dtype),
            grid=(grid_b,),
            in_specs=[
                pl.BlockSpec((TB, L), lambda i: (i, 0)),                  # x
                _const_spec((L, H), lambda i: (0, 0), single_buffer=single_buffer),
                _const_spec((1, H), lambda i: (0, 0), single_buffer=single_buffer),
                _const_spec((H, O), lambda i: (0, 0), single_buffer=single_buffer),
                _const_spec((1, O), lambda i: (0, 0), single_buffer=single_buffer),
            ],
            out_specs=pl.BlockSpec((TB, O), lambda i: (i, 0)),
            compiler_params=vmem_params(need, ("parallel",)),
            cost_estimate=cost,
        )(x, w1, b1_2d, w2, b2_2d)

    # -------------------- path B: column-tiled w2 (large weights / v7x) -----
    if O <= 128 or O <= out_tile:
        TN = O
    else:
        TN = max(128, (out_tile // 128) * 128)
    grid_o = _cdiv(O, TN)

    def run_coltiled(single_buffer):
        need = ((nbytes(w1) + nbytes(b1)) * (1 if single_buffer else 2)
                + 2 * (H * TN + TN) * jnp.dtype(w2.dtype).itemsize
                + 2 * TB * L * itm
                + 2 * TB * TN * itm
                + 4 * TB * H)               # f32 hidden scratch
        return pl.pallas_call(
            _decoder_coltiled_kernel,
            out_shape=jax.ShapeDtypeStruct((B, O), x.dtype),
            grid=(grid_b, grid_o),
            in_specs=[
                pl.BlockSpec((TB, L), lambda i, j: (i, 0)),               # x
                _const_spec((L, H), lambda i, j: (0, 0), single_buffer=single_buffer),
                _const_spec((1, H), lambda i, j: (0, 0), single_buffer=single_buffer),
                pl.BlockSpec((H, TN), lambda i, j: (0, j)),               # w2 cols
                pl.BlockSpec((1, TN), lambda i, j: (0, j)),               # b2 cols
            ],
            out_specs=pl.BlockSpec((TB, TN), lambda i, j: (i, j)),
            scratch_shapes=[pltpu.VMEM((TB, H), jnp.float32)],
            compiler_params=vmem_params(need, ("parallel", "arbitrary")),
            cost_estimate=cost,
        )(x, w1, b1_2d, w2, b2_2d)

    runner = run_coltiled if weight_bytes > weight_vmem_budget else run_fused
    if single_buffer_weights:
        try:
            return runner(True)
        except Exception:      # pl.Buffered(1) unsupported -> default buffering
            pass
    return runner(False)


def init_decoder_params(key, latent_dim, hidden_dim, output_dim, dtype=jnp.float32):
    k1, k2, k3, k4 = jax.random.split(key, 4)
    # Mimics nn.Linear's uniform(-1/sqrt(fan_in), 1/sqrt(fan_in)) init.
    lim1 = 1.0 / (latent_dim ** 0.5)
    lim2 = 1.0 / (hidden_dim ** 0.5)
    w1 = jax.random.uniform(k1, (latent_dim, hidden_dim), dtype, -lim1, lim1)
    b1 = jax.random.uniform(k2, (hidden_dim,), dtype, -lim1, lim1)
    w2 = jax.random.uniform(k3, (hidden_dim, output_dim), dtype, -lim2, lim2)
    b2 = jax.random.uniform(k4, (output_dim,), dtype, -lim2, lim2)
    return w1, b1, w2, b2


def _reference_f64(x, w1, b1, w2, b2):
    # Exact host-side float64 reference (avoids TPU matmul-precision ambiguity).
    xn, w1n, b1n, w2n, b2n = (np.asarray(a, np.float64) for a in (x, w1, b1, w2, b2))
    return np.maximum(xn @ w1n + b1n, 0.0) @ w2n + b2n


if __name__ == "__main__":
    key = jax.random.PRNGKey(0)
    latent_dim, hidden_dim, output_dim = 16, 32, 64
    kx, kp, kx2, kp2 = jax.random.split(key, 4)

    w1, b1, w2, b2 = init_decoder_params(kp, latent_dim, hidden_dim, output_dim)

    # Tolerances are loose enough to cover MXU f32 pass-count differences across
    # TPU generations while still catching structural bugs.
    TOL = dict(atol=5e-2, rtol=5e-2)

    # 1) Small batch, single tile, fully resident weights.
    x = jax.random.normal(kx, (8, latent_dim), jnp.float32)
    out = decoder_forward(x, w1, b1, w2, b2)
    jax.block_until_ready(out)
    assert out.shape == (8, output_dim)
    np.testing.assert_allclose(np.asarray(out), _reference_f64(x, w1, b1, w2, b2), **TOL)

    # 2) Non-aligned batch -> >=2 grid tiles with a partial trailing block.
    x2 = jax.random.normal(kx2, (300, latent_dim), jnp.float32)
    out2 = decoder_forward(x2, w1, b1, w2, b2)
    jax.block_until_ready(out2)
    assert out2.shape == (300, output_dim)
    np.testing.assert_allclose(np.asarray(out2), _reference_f64(x2, w1, b1, w2, b2), **TOL)

    # 3) Force the column-tiled (large-weight / v7x) path and check it too.
    O3 = 256
    w1c, b1c, w2c, b2c = init_decoder_params(kp2, latent_dim, hidden_dim, O3)
    out3 = decoder_forward(x2, w1c, b1c, w2c, b2c,
                           weight_vmem_budget=0, out_tile=128, batch_tile=128)
    jax.block_until_ready(out3)
    assert out3.shape == (300, O3)
    np.testing.assert_allclose(np.asarray(out3),
                               _reference_f64(x2, w1c, b1c, w2c, b2c), **TOL)

    # 4) bf16 operand path (v5e-friendly), f32 accumulation in-kernel.
    outb = decoder_forward(x.astype(jnp.bfloat16),
                           w1.astype(jnp.bfloat16), b1.astype(jnp.bfloat16),
                           w2.astype(jnp.bfloat16), b2.astype(jnp.bfloat16))
    jax.block_until_ready(outb)
    np.testing.assert_allclose(np.asarray(outb.astype(jnp.float32)),
                               _reference_f64(x, w1, b1, w2, b2),
                               atol=1e-1, rtol=1e-1)

    print("KERNEL_OK")
</pallas_src>

<mosaic_0001>
module attributes {stable_mosaic.version = 11 : i64} {
  func.func @_decoder_fused_kernel(%arg0: i32, %arg1: memref<8x16xf32, #tpu.memory_space<vmem>>, %arg2: memref<16x32xf32, #tpu.memory_space<vmem>>, %arg3: memref<1x32xf32, #tpu.memory_space<vmem>>, %arg4: memref<32x64xf32, #tpu.memory_space<vmem>>, %arg5: memref<1x64xf32, #tpu.memory_space<vmem>>, %arg6: memref<8x64xf32, #tpu.memory_space<vmem>>) attributes {dimension_semantics = [#tpu.dimension_semantics<parallel>], iteration_bounds = array<i64: 1>, scalar_prefetch = 0 : i64, scratch_operands = 0 : i64, tpu.core_type = #tpu.core_type<tc>, window_params = [{transform_indices = @transform_0, window_bounds = array<i64: 8, 16>}, {pipeline_mode = #tpu.pipeline_mode<synchronous>, transform_indices = @transform_1, window_bounds = array<i64: 16, 32>}, {pipeline_mode = #tpu.pipeline_mode<synchronous>, transform_indices = @transform_2, window_bounds = array<i64: 1, 32>}, {pipeline_mode = #tpu.pipeline_mode<synchronous>, transform_indices = @transform_3, window_bounds = array<i64: 32, 64>}, {pipeline_mode = #tpu.pipeline_mode<synchronous>, transform_indices = @transform_4, window_bounds = array<i64: 1, 64>}, {transform_indices = @transform_5, window_bounds = array<i64: 8, 64>}]} {
    %c0 = arith.constant 0 : index
    %c0_0 = arith.constant 0 : index
    %0 = vector.load %arg1[%c0, %c0_0] : memref<8x16xf32, #tpu.memory_space<vmem>>, vector<8x16xf32>
    %c0_1 = arith.constant 0 : index
    %c0_2 = arith.constant 0 : index
    %1 = vector.load %arg2[%c0_1, %c0_2] : memref<16x32xf32, #tpu.memory_space<vmem>>, vector<16x32xf32>
    %cst = arith.constant dense<0.000000e+00> : vector<8x32xf32>
    %2 = tpu.matmul %0, %1, %cst {dimension_numbers = #tpu.dot_dimension_numbers<[1], [0], [0], [1], [0, 0, 1, 1], [], []>} : vector<8x16xf32>, vector<16x32xf32>, vector<8x32xf32> -> vector<8x32xf32>
    %c0_3 = arith.constant 0 : index
    %c0_4 = arith.constant 0 : index
    %3 = vector.load %arg3[%c0_3, %c0_4] : memref<1x32xf32, #tpu.memory_space<vmem>>, vector<1x32xf32>
    %4 = vector.broadcast %3 : vector<1x32xf32> to vector<8x32xf32>
    %5 = arith.addf %2, %4 : vector<8x32xf32>
    %cst_5 = arith.constant 0.000000e+00 : f32
    %6 = vector.broadcast %cst_5 : f32 to vector<8x32xf32>
    %7 = arith.maximumf %5, %6 : vector<8x32xf32>
    %c0_6 = arith.constant 0 : index
    %c0_7 = arith.constant 0 : index
    %8 = vector.load %arg4[%c0_6, %c0_7] : memref<32x64xf32, #tpu.memory_space<vmem>>, vector<32x64xf32>
    %cst_8 = arith.constant dense<0.000000e+00> : vector<8x64xf32>
    %9 = tpu.matmul %7, %8, %cst_8 {dimension_numbers = #tpu.dot_dimension_numbers<[1], [0], [0], [1], [0, 0, 1, 1], [], []>} : vector<8x32xf32>, vector<32x64xf32>, vector<8x64xf32> -> vector<8x64xf32>
    %c0_9 = arith.constant 0 : index
    %c0_10 = arith.constant 0 : index
    %10 = vector.load %arg5[%c0_9, %c0_10] : memref<1x64xf32, #tpu.memory_space<vmem>>, vector<1x64xf32>
    %11 = vector.broadcast %10 : vector<1x64xf32> to vector<8x64xf32>
    %12 = arith.addf %9, %11 : vector<8x64xf32>
    %c0_11 = arith.constant 0 : index
    %c0_12 = arith.constant 0 : index
    %13 = vector.load %arg6[%c0_11, %c0_12] : memref<8x64xf32, #tpu.memory_space<vmem>>, vector<8x64xf32>
    tpu.vector_store %arg6[%c0_11, %c0_12], %12 {strides = array<i32>} : memref<8x64xf32, #tpu.memory_space<vmem>>, vector<8x64xf32>,
    return
  }
  func.func @transform_0(%arg0: i32) -> (i32, i32) {
    %c0_i32 = arith.constant 0 : i32
    %c0_i32_0 = arith.constant 0 : i32
    return %arg0, %c0_i32 : i32, i32
  }
  func.func @transform_1(%arg0: i32) -> (i32, i32) {
    %c0_i32 = arith.constant 0 : i32
    %c0_i32_0 = arith.constant 0 : i32
    %c0_i32_1 = arith.constant 0 : i32
    return %c0_i32, %c0_i32_0 : i32, i32
  }
  func.func @transform_2(%arg0: i32) -> (i32, i32) {
    %c0_i32 = arith.constant 0 : i32
    %c0_i32_0 = arith.constant 0 : i32
    %c0_i32_1 = arith.constant 0 : i32
    return %c0_i32, %c0_i32_0 : i32, i32
  }
  func.func @transform_3(%arg0: i32) -> (i32, i32) {
    %c0_i32 = arith.constant 0 : i32
    %c0_i32_0 = arith.constant 0 : i32
    %c0_i32_1 = arith.constant 0 : i32
    return %c0_i32, %c0_i32_0 : i32, i32
  }
  func.func @transform_4(%arg0: i32) -> (i32, i32) {
    %c0_i32 = arith.constant 0 : i32
    %c0_i32_0 = arith.constant 0 : i32
    %c0_i32_1 = arith.constant 0 : i32
    return %c0_i32, %c0_i32_0 : i32, i32
  }
  func.func @transform_5(%arg0: i32) -> (i32, i32) {
    %c0_i32 = arith.constant 0 : i32
    %c0_i32_0 = arith.constant 0 : i32
    return %arg0, %c0_i32 : i32, i32
  }
}

module attributes {stable_mosaic.version = 11 : i64} {
  func.func @_decoder_fused_kernel(%arg0: i32, %arg1: memref<8x16xf32, #tpu.memory_space<vmem>>, %arg2: memref<16x32xf32, #tpu.memory_space<vmem>>, %arg3: memref<1x32xf32, #tpu.memory_space<vmem>>, %arg4: memref<32x64xf32, #tpu.memory_space<vmem>>, %arg5: memref<1x64xf32, #tpu.memory_space<vmem>>, %arg6: memref<8x64xf32, #tpu.memory_space<vmem>>) attributes {dimension_semantics = [#tpu.dimension_semantics<parallel>], iteration_bounds = array<i64: 1>, scalar_prefetch = 0 : i64, scratch_operands = 0 : i64, tpu.core_type = #tpu.core_type<tc>, window_params = [{transform_indices = @transform_0, window_bounds = array<i64: 8, 16>}, {pipeline_mode = #tpu.pipeline_mode<synchronous>, transform_indices = @transform_1, window_bounds = array<i64: 16, 32>}, {pipeline_mode = #tpu.pipeline_mode<synchronous>, transform_indices = @transform_2, window_bounds = array<i64: 1, 32>}, {pipeline_mode = #tpu.pipeline_mode<synchronous>, transform_indices = @transform_3, window_bounds = array<i64: 32, 64>}, {pipeline_mode = #tpu.pipeline_mode<synchronous>, transform_indices = @transform_4, window_bounds = array<i64: 1, 64>}, {transform_indices = @transform_5, window_bounds = array<i64: 8, 64>}]} {
    %c0 = arith.constant 0 : index
    %c0_0 = arith.constant 0 : index
    %0 = vector.load %arg1[%c0, %c0_0] : memref<8x16xf32, #tpu.memory_space<vmem>>, vector<8x16xf32>
    %c0_1 = arith.constant 0 : index
    %c0_2 = arith.constant 0 : index
    %1 = vector.load %arg2[%c0_1, %c0_2] : memref<16x32xf32, #tpu.memory_space<vmem>>, vector<16x32xf32>
    %cst = arith.constant dense<0.000000e+00> : vector<8x32xf32>
    %2 = tpu.matmul %0, %1, %cst {dimension_numbers = #tpu.dot_dimension_numbers<[1], [0], [0], [1], [0, 0, 1, 1], [], []>} : vector<8x16xf32>, vector<16x32xf32>, vector<8x32xf32> -> vector<8x32xf32>
    %c0_3 = arith.constant 0 : index
    %c0_4 = arith.constant 0 : index
    %3 = vector.load %arg3[%c0_3, %c0_4] : memref<1x32xf32, #tpu.memory_space<vmem>>, vector<1x32xf32>
    %4 = vector.broadcast %3 : vector<1x32xf32> to vector<8x32xf32>
    %5 = arith.addf %2, %4 : vector<8x32xf32>
    %cst_5 = arith.constant 0.000000e+00 : f32
    %6 = vector.broadcast %cst_5 : f32 to vector<8x32xf32>
    %7 = arith.maximumf %5, %6 : vector<8x32xf32>
    %c0_6 = arith.constant 0 : index
    %c0_7 = arith.constant 0 : index
    %8 = vector.load %arg4[%c0_6, %c0_7] : memref<32x64xf32, #tpu.memory_space<vmem>>, vector<32x64xf32>
    %cst_8 = arith.constant dense<0.000000e+00> : vector<8x64xf32>
    %9 = tpu.matmul %7, %8, %cst_8 {dimension_numbers = #tpu.dot_dimension_numbers<[1], [0], [0], [1], [0, 0, 1, 1], [], []>} : vector<8x32xf32>, vector<32x64xf32>, vector<8x64xf32> -> vector<8x64xf32>
    %c0_9 = arith.constant 0 : index
    %c0_10 = arith.constant 0 : index
    %10 = vector.load %arg5[%c0_9, %c0_10] : memref<1x64xf32, #tpu.memory_space<vmem>>, vector<1x64xf32>
    %11 = vector.broadcast %10 : vector<1x64xf32> to vector<8x64xf32>
    %12 = arith.addf %9, %11 : vector<8x64xf32>
    %c0_11 = arith.constant 0 : index
    %c0_12 = arith.constant 0 : index
    %13 = vector.load %arg6[%c0_11, %c0_12] : memref<8x64xf32, #tpu.memory_space<vmem>>, vector<8x64xf32>
    tpu.vector_store %arg6[%c0_11, %c0_12], %12 {strides = array<i32>} : memref<8x64xf32, #tpu.memory_space<vmem>>, vector<8x64xf32>,
    return
  }
  func.func @transform_0(%arg0: i32) -> (i32, i32) {
    %c0_i32 = arith.constant 0 : i32
    %c0_i32_0 = arith.constant 0 : i32
    return %arg0, %c0_i32 : i32, i32
  }
  func.func @transform_1(%arg0: i32) -> (i32, i32) {
    %c0_i32 = arith.constant 0 : i32
    %c0_i32_0 = arith.constant 0 : i32
    %c0_i32_1 = arith.constant 0 : i32
    return %c0_i32, %c0_i32_0 : i32, i32
  }
  func.func @transform_2(%arg0: i32) -> (i32, i32) {
    %c0_i32 = arith.constant 0 : i32
    %c0_i32_0 = arith.constant 0 : i32
    %c0_i32_1 = arith.constant 0 : i32
    return %c0_i32, %c0_i32_0 : i32, i32
  }
  func.func @transform_3(%arg0: i32) -> (i32, i32) {
    %c0_i32 = arith.constant 0 : i32
    %c0_i32_0 = arith.constant 0 : i32
    %c0_i32_1 = arith.constant 0 : i32
    return %c0_i32, %c0_i32_0 : i32, i32
  }
  func.func @transform_4(%arg0: i32) -> (i32, i32) {
    %c0_i32 = arith.constant 0 : i32
    %c0_i32_0 = arith.constant 0 : i32
    %c0_i32_1 = arith.constant 0 : i32
    return %c0_i32, %c0_i32_0 : i32, i32
  }
  func.func @transform_5(%arg0: i32) -> (i32, i32) {
    %c0_i32 = arith.constant 0 : i32
    %c0_i32_0 = arith.constant 0 : i32
    return %arg0, %c0_i32 : i32, i32
  }
}

</mosaic_0001>

<bundles_post_ra>
// kernel: tpu_custom_call.1
= control target key start
LH: loop header
LB: loop body
LE: loop exit
PB: predicated region body
PF: predicated region fallthrough
CT: control target
= control target key end

     0   :  { %10 = vsyncpa [#allocation3], 0  ;;  %s489_s0 = inlined_call_operand.hbm [shape: f32[8,16], index: 0, kind: input, shape index: {}]   ;;  %s490_s1 = inlined_call_operand.hbm [shape: f32[16,32], index: 1, kind: input, shape index: {}]   ;;  %s491_s2 = inlined_call_operand.vmem [shape: f32[1,32], index: 2, kind: input, shape index: {}]   ;;  %s492_s3 = inlined_call_operand.hbm [shape: f32[32,64], index: 3, kind: input, shape index: {}]   ;;  %s493_s4 = inlined_call_operand.vmem [shape: f32[1,64], index: 4, kind: input, shape index: {}]   ;;  %s494_s5 = inlined_call_operand.hbm [shape: f32[8,64], index: 5, kind: output, shape index: {}]  }
   0x1   :  { %11 = vsyncpa [#allocation6], 0 }
   0x2   :  { %12 = vsyncpa [#allocation4], 0  ;;  %s390_s18 = smov [#allocation5]   ;;  %s296_s22 = scalar_lea.hbm %s490_s1, 256 }
   0x3   :  { %s28_s19 = sshll.u32 %s390_s18, 4  ;;  %p297_p0 = scmp.ne.s32.totalorder %s490_s1, %s296_s22  ;;  %s29_s19 = int_to_ptr.vmem [resolvable:$true] %s28_s19 }
   0x4   :  { %p300_p1 = scmp.lt.u32.totalorder %s296_s22, %s490_s1 }
   0x6   :  { %p302_p2 = pnand %p300_p1, %p297_p0 }
   0x8   :  { %305 = shalt.err (!%p302_p2)
}
   0x9   :  { %s306_s27 = scalar_lea.vmem %s29_s19, 256  ;;  %p311_p4 = scmp.lt.s32.totalorder %s29_s19, %s29_s19 }
   0xa   :  { %p307_p3 = scmp.ne.s32.totalorder %s29_s19, %s306_s27  ;;  %p312_p5 = scmp.lt.s32.totalorder %s306_s27, %s306_s27 }
   0xc   :  { %p313_p6 = por %p312_p5, %p311_p4 }
   0xe   :  { %p314_p7 = pnand %p313_p6, %p307_p3 }
  0x10   :  { %317 = shalt.err (!%p314_p7)
}
  0x11   :  { %s391_s28 = smov 128   ;;  %s392_s29 = smov 8  }
  0x12   :  { %34 = dma.hbm_to_vmem [thread:$0]  %s490_s1, 256, %s29_s19, [#allocation6], %s391_s28, %s391_s28, %s392_s29  }
  0x13   :  { %s393_s7 = smov [#allocation2]   ;;  %s394_s9 = smov [#allocation7]  }
  0x14   :  { %s19_s8 = sshll.u32 %s393_s7, 4  ;;  %s42_s10 = sshll.u32 %s394_s9, 4  ;;  %s20_s8 = int_to_ptr.vmem [resolvable:$true] %s19_s8  ;;  %s43_s10 = int_to_ptr.vmem [resolvable:$true] %s42_s10 }
  0x15   :  { %s318_s13 = scalar_lea.hbm %s489_s0, 128 }
  0x16   :  { %p319_p8 = scmp.ne.s32.totalorder %s489_s0, %s318_s13  ;;  %p322_p9 = scmp.lt.u32.totalorder %s318_s13, %s489_s0 }
  0x18   :  { %p324_p10 = pnand %p322_p9, %p319_p8 }
  0x1a   :  { %327 = shalt.err (!%p324_p10)
}
  0x1b   :  { %s328_s1 = scalar_lea.vmem %s20_s8, 128  ;;  %p333_p12 = scmp.lt.s32.totalorder %s20_s8, %s20_s8 }
  0x1c   :  { %p329_p11 = scmp.ne.s32.totalorder %s20_s8, %s328_s1  ;;  %p334_p13 = scmp.lt.s32.totalorder %s328_s1, %s328_s1 }
  0x1e   :  { %p335_p0 = por %p334_p13, %p333_p12 }
  0x20   :  { %p336_p1 = pnand %p335_p0, %p329_p11 }
  0x22   :  { %339 = shalt.err (!%p336_p1)
}
  0x23   :  { %22 = dma.hbm_to_vmem [thread:$0]  %s489_s0, 128, %s20_s8, [#allocation3]  }
  0x24   :  { %s340_s22 = scalar_lea.hbm %s492_s3, 512 }
  0x25   :  { %p341_p2 = scmp.ne.s32.totalorder %s492_s3, %s340_s22  ;;  %p344_p3 = scmp.lt.u32.totalorder %s340_s22, %s492_s3 }
  0x27   :  { %p346_p4 = pnand %p344_p3, %p341_p2 }
  0x29   :  { %349 = shalt.err (!%p346_p4)
}
  0x2a   :  { %s350_s27 = scalar_lea.vmem %s43_s10, 512  ;;  %p355_p6 = scmp.lt.s32.totalorder %s43_s10, %s43_s10 }
  0x2b   :  { %p351_p5 = scmp.ne.s32.totalorder %s43_s10, %s350_s27  ;;  %p356_p7 = scmp.lt.s32.totalorder %s350_s27, %s350_s27 }
  0x2d   :  { %p357_p8 = por %p356_p7, %p355_p6 }
  0x2f   :  { %p358_p9 = pnand %p357_p8, %p351_p5 }
  0x31   :  { %361 = shalt.err (!%p358_p9)
}
  0x32   :  { %48 = dma.hbm_to_vmem [thread:$0]  %s492_s3, 512, %s43_s10, [#allocation6], %s391_s28, %s391_s28, %s392_s29  }
  0x33   :  { %384 = dma.done.wait [#allocation3], 128  }
  0x34   :  { %385 = vsyncadd [#allocation3], 4294967168 }
  0x35   :  { %386 = dma.done.wait [#allocation6], 768  }
  0x36   :  { %387 = vsyncadd [#allocation6], 4294966528  ;;  %v395_v0 = vmov 0.0|0.0   ;;  %vm396_vm0 = vmmov 0   ;;  %v397_v1 = vmov 0.0   ;;  %v61_v2 = vld [vmem:[#allocation5] sm:$0xff] }
  0x37   :  { %278 = vmatprep.subr.bf16.mxu0 %v395_v0  ;;  %264 = vmatprep.mubr.msk.f32.mxu0 %vm396_vm0, %v397_v1  ;;  %v62_v3 = vld [vmem:[#allocation5 + $0x8] sm:$0xff]  ;;  %v145_v5 = vld [vmem:[#allocation7] sm:$0xff]  ;;  %v146_v6 = vld [vmem:[#allocation7 + $0x8] sm:$0xff]  ;;  %vm70_vm1 = vcmask 130048   ;;  %vm156_vm2 = vcmask 261120   ;;  %s398_s7 = smov [#allocation8]  }
  0x38   :  { %281 = vmatprep.subr.bf16.mxu1 %v395_v0  ;;  %275 = vmatprep.mubr.msk.f32.mxu1 %vm396_vm0, %v397_v1  ;;  %v279_v4 = vpack.c.bf16 %v62_v3, %v61_v2  ;;  %v282_v7 = vpack.c.bf16 %v146_v6, %v145_v5  ;;  %v60_v8 = vld [vmem:[#allocation2] sm:$0xff]  ;;  %v147_v9 = vld [vmem:[#allocation7 + $0x10] sm:$0xff]  ;;  %v148_v10 = vld [vmem:[#allocation7 + $0x18] sm:$0xff]  ;;  %s238_s8 = sshll.u32 %s398_s7, 4  ;;  %vm230_vm3 = vcmask 523264   ;;  %s239_s8 = int_to_ptr.vmem [resolvable:$true] %s238_s8 }
  0x39   :  { %v285_v11 = vpack.c.bf16 %v148_v10, %v147_v9  ;;  %v248_v12 = vld [vmem:[%s491_s2] ss:$0 sm:$0xff]  ;;  %s362_s9 = scalar_lea.vmem %s239_s8, 128  ;;  %p367_p11 = scmp.lt.s32.totalorder %s239_s8, %s239_s8 }
  0x3a   :  { %280 = vmatpush3.bf16.msra.mxu0 %v279_v4  ;;  %283 = vmatpush3.bf16.msra.mxu1 %v282_v7  ;;  %v250_v17 = vld [vmem:[%s493_s4] ss:$0 sm:$0xff]  ;;  %p363_p10 = scmp.ne.s32.totalorder %s239_s8, %s362_s9  ;;  %p368_p12 = scmp.lt.s32.totalorder %s362_s9, %s362_s9 }
  0x3b   :  { %284 = vmatprep.subr.bf16.mxu1 %v395_v0 }
  0x3c   :  { %p369_p13 = por %p368_p12, %p367_p11 }
  0x3d   :  { %265 = vmatmul.mubr.msk.f32.vlgmr.msra.gmra.mrb[0].mxu0 %vm70_vm1, %v60_v8 }
  0x3e   :  { %286 = vmatpush3.bf16.msra.mxu1 %v285_v11  ;;  %p370_p0 = pnand %p369_p13, %p363_p10 }
 0x110   :  { %v140_v13 = vpop.f32.mrb[0].mxu0 }
 0x111   :  { %v141_v14 = vadd.f32 %v248_v12, %v140_v13  ;;  %v266_v15 = vpop.f32.mrb[1].mxu0 }
 0x113   :  { %v144_v16 = vmax.f32 %v141_v14, 0.0 }
 0x115   :  { %276 = vmatmul.mubr.msk.f32.vlgmr.msra.gmra.mrb[0].mxu1 %vm156_vm2, %v144_v16 }
 0x1e8   :  { %v226_v18 = vpop.f32.mrb[0].mxu1 }
 0x1e9   :  { %v227_v19 = vadd.f32 %v250_v17, %v226_v18  ;;  %v277_v20 = vpop.f32.mrb[1].mxu1 }
 0x1eb   :  { %231 = vst.msk [vmem:[#allocation8] sm:$0xff] %vm230_vm3, %v227_v19 }
 0x1ec   :  { %373 = shalt.err (!%p370_p0)
}
 0x1ed   :  { %s374_s11 = scalar_lea.hbm %s494_s5, 128 }
 0x1ee   :  { %p375_p1 = scmp.ne.s32.totalorder %s494_s5, %s374_s11  ;;  %p378_p2 = scmp.lt.u32.totalorder %s374_s11, %s494_s5 }
 0x1f0   :  { %p380_p3 = pnand %p378_p2, %p375_p1 }
 0x1f2   :  { %383 = shalt.err (!%p380_p3)
}
 0x1f3   :  { %241 = dma.vmem_to_hbm [thread:$0]  %s239_s8, 128, %s494_s5, [#allocation4]  }
 0x1f4   :  { %388 = dma.done.wait [#allocation4], 128  }
 0x1f5   :  { %389 = vsyncadd [#allocation4], 4294967168 }
 0x1f6   :  { %245 = vsyncpa [#allocation3], 1 }
 0x1f7   :  { %246 = vsyncpa [#allocation6], 1 }
 0x1f8   :  { %247 = vsyncpa [#allocation4], 1 }

// kernel: tpu_custom_call.1
= control target key start
LH: loop header
LB: loop body
LE: loop exit
PB: predicated region body
PF: predicated region fallthrough
CT: control target
= control target key end

     0   :  { %10 = vsyncpa [#allocation3], 0  ;;  %s489_s0 = inlined_call_operand.hbm [shape: f32[8,16], index: 0, kind: input, shape index: {}]   ;;  %s490_s1 = inlined_call_operand.hbm [shape: f32[16,32], index: 1, kind: input, shape index: {}]   ;;  %s491_s2 = inlined_call_operand.vmem [shape: f32[1,32], index: 2, kind: input, shape index: {}]   ;;  %s492_s3 = inlined_call_operand.hbm [shape: f32[32,64], index: 3, kind: input, shape index: {}]   ;;  %s493_s4 = inlined_call_operand.vmem [shape: f32[1,64], index: 4, kind: input, shape index: {}]   ;;  %s494_s5 = inlined_call_operand.hbm [shape: f32[8,64], index: 5, kind: output, shape index: {}]  }
   0x1   :  { %11 = vsyncpa [#allocation6], 0 }
   0x2   :  { %12 = vsyncpa [#allocation4], 0  ;;  %s390_s18 = smov [#allocation5]   ;;  %s296_s22 = scalar_lea.hbm %s490_s1, 256 }
   0x3   :  { %s28_s19 = sshll.u32 %s390_s18, 4  ;;  %p297_p0 = scmp.ne.s32.totalorder %s490_s1, %s296_s22  ;;  %s29_s19 = int_to_ptr.vmem [resolvable:$true] %s28_s19 }
   0x4   :  { %p300_p1 = scmp.lt.u32.totalorder %s296_s22, %s490_s1 }
   0x6   :  { %p302_p2 = pnand %p300_p1, %p297_p0 }
   0x8   :  { %305 = shalt.err (!%p302_p2)
}
   0x9   :  { %s306_s27 = scalar_lea.vmem %s29_s19, 256  ;;  %p311_p4 = scmp.lt.s32.totalorder %s29_s19, %s29_s19 }
   0xa   :  { %p307_p3 = scmp.ne.s32.totalorder %s29_s19, %s306_s27  ;;  %p312_p5 = scmp.lt.s32.totalorder %s306_s27, %s306_s27 }
   0xc   :  { %p313_p6 = por %p312_p5, %p311_p4 }
   0xe   :  { %p314_p7 = pnand %p313_p6, %p307_p3 }
  0x10   :  { %317 = shalt.err (!%p314_p7)
}
  0x11   :  { %s391_s28 = smov 128   ;;  %s392_s29 = smov 8  }
  0x12   :  { %34 = dma.hbm_to_vmem [thread:$0]  %s490_s1, 256, %s29_s19, [#allocation6], %s391_s28, %s391_s28, %s392_s29  }
  0x13   :  { %s393_s7 = smov [#allocation2]   ;;  %s394_s9 = smov [#allocation7]  }
  0x14   :  { %s19_s8 = sshll.u32 %s393_s7, 4  ;;  %s42_s10 = sshll.u32 %s394_s9, 4  ;;  %s20_s8 = int_to_ptr.vmem [resolvable:$true] %s19_s8  ;;  %s43_s10 = int_to_ptr.vmem [resolvable:$true] %s42_s10 }
  0x15   :  { %s318_s13 = scalar_lea.hbm %s489_s0, 128 }
  0x16   :  { %p319_p8 = scmp.ne.s32.totalorder %s489_s0, %s318_s13  ;;  %p322_p9 = scmp.lt.u32.totalorder %s318_s13, %s489_s0 }
  0x18   :  { %p324_p10 = pnand %p322_p9, %p319_p8 }
  0x1a   :  { %327 = shalt.err (!%p324_p10)
}
  0x1b   :  { %s328_s1 = scalar_lea.vmem %s20_s8, 128  ;;  %p333_p12 = scmp.lt.s32.totalorder %s20_s8, %s20_s8 }
  0x1c   :  { %p329_p11 = scmp.ne.s32.totalorder %s20_s8, %s328_s1  ;;  %p334_p13 = scmp.lt.s32.totalorder %s328_s1, %s328_s1 }
  0x1e   :  { %p335_p0 = por %p334_p13, %p333_p12 }
  0x20   :  { %p336_p1 = pnand %p335_p0, %p329_p11 }
  0x22   :  { %339 = shalt.err (!%p336_p1)
}
  0x23   :  { %22 = dma.hbm_to_vmem [thread:$0]  %s489_s0, 128, %s20_s8, [#allocation3]  }
  0x24   :  { %s340_s22 = scalar_lea.hbm %s492_s3, 512 }
  0x25   :  { %p341_p2 = scmp.ne.s32.totalorder %s492_s3, %s340_s22  ;;  %p344_p3 = scmp.lt.u32.totalorder %s340_s22, %s492_s3 }
  0x27   :  { %p346_p4 = pnand %p344_p3, %p341_p2 }
  0x29   :  { %349 = shalt.err (!%p346_p4)
}
  0x2a   :  { %s350_s27 = scalar_lea.vmem %s43_s10, 512  ;;  %p355_p6 = scmp.lt.s32.totalorder %s43_s10, %s43_s10 }
  0x2b   :  { %p351_p5 = scmp.ne.s32.totalorder %s43_s10, %s350_s27  ;;  %p356_p7 = scmp.lt.s32.totalorder %s350_s27, %s350_s27 }
  0x2d   :  { %p357_p8 = por %p356_p7, %p355_p6 }
  0x2f   :  { %p358_p9 = pnand %p357_p8, %p351_p5 }
  0x31   :  { %361 = shalt.err (!%p358_p9)
}
  0x32   :  { %48 = dma.hbm_to_vmem [thread:$0]  %s492_s3, 512, %s43_s10, [#allocation6], %s391_s28, %s391_s28, %s392_s29  }
  0x33   :  { %384 = dma.done.wait [#allocation3], 128  }
  0x34   :  { %385 = vsyncadd [#allocation3], 4294967168 }
  0x35   :  { %386 = dma.done.wait [#allocation6], 768  }
  0x36   :  { %387 = vsyncadd [#allocation6], 4294966528  ;;  %v395_v0 = vmov 0.0|0.0   ;;  %vm396_vm0 = vmmov 0   ;;  %v397_v1 = vmov 0.0   ;;  %v61_v2 = vld [vmem:[#allocation5] sm:$0xff] }
  0x37   :  { %278 = vmatprep.subr.bf16.mxu0 %v395_v0  ;;  %264 = vmatprep.mubr.msk.f32.mxu0 %vm396_vm0, %v397_v1  ;;  %v62_v3 = vld [vmem:[#allocation5 + $0x8] sm:$0xff]  ;;  %v145_v5 = vld [vmem:[#allocation7] sm:$0xff]  ;;  %v146_v6 = vld [vmem:[#allocation7 + $0x8] sm:$0xff]  ;;  %vm70_vm1 = vcmask 130048   ;;  %vm156_vm2 = vcmask 261120   ;;  %s398_s7 = smov [#allocation8]  }
  0x38   :  { %281 = vmatprep.subr.bf16.mxu1 %v395_v0  ;;  %275 = vmatprep.mubr.msk.f32.mxu1 %vm396_vm0, %v397_v1  ;;  %v279_v4 = vpack.c.bf16 %v62_v3, %v61_v2  ;;  %v282_v7 = vpack.c.bf16 %v146_v6, %v145_v5  ;;  %v60_v8 = vld [vmem:[#allocation2] sm:$0xff]  ;;  %v147_v9 = vld [vmem:[#allocation7 + $0x10] sm:$0xff]  ;;  %v148_v10 = vld [vmem:[#allocation7 + $0x18] sm:$0xff]  ;;  %s238_s8 = sshll.u32 %s398_s7, 4  ;;  %vm230_vm3 = vcmask 523264   ;;  %s239_s8 = int_to_ptr.vmem [resolvable:$true] %s238_s8 }
  0x39   :  { %v285_v11 = vpack.c.bf16 %v148_v10, %v147_v9  ;;  %v248_v12 = vld [vmem:[%s491_s2] ss:$0 sm:$0xff]  ;;  %s362_s9 = scalar_lea.vmem %s239_s8, 128  ;;  %p367_p11 = scmp.lt.s32.totalorder %s239_s8, %s239_s8 }
  0x3a   :  { %280 = vmatpush3.bf16.msra.mxu0 %v279_v4  ;;  %283 = vmatpush3.bf16.msra.mxu1 %v282_v7  ;;  %v250_v17 = vld [vmem:[%s493_s4] ss:$0 sm:$0xff]  ;;  %p363_p10 = scmp.ne.s32.totalorder %s239_s8, %s362_s9  ;;  %p368_p12 = scmp.lt.s32.totalorder %s362_s9, %s362_s9 }
  0x3b   :  { %284 = vmatprep.subr.bf16.mxu1 %v395_v0 }
  0x3c   :  { %p369_p13 = por %p368_p12, %p367_p11 }
  0x3d   :  { %265 = vmatmul.mubr.msk.f32.vlgmr.msra.gmra.mrb[0].mxu0 %vm70_vm1, %v60_v8 }
  0x3e   :  { %286 = vmatpush3.bf16.msra.mxu1 %v285_v11  ;;  %p370_p0 = pnand %p369_p13, %p363_p10 }
 0x110   :  { %v140_v13 = vpop.f32.mrb[0].mxu0 }
 0x111   :  { %v141_v14 = vadd.f32 %v248_v12, %v140_v13  ;;  %v266_v15 = vpop.f32.mrb[1].mxu0 }
 0x113   :  { %v144_v16 = vmax.f32 %v141_v14, 0.0 }
 0x115   :  { %276 = vmatmul.mubr.msk.f32.vlgmr.msra.gmra.mrb[0].mxu1 %vm156_vm2, %v144_v16 }
 0x1e8   :  { %v226_v18 = vpop.f32.mrb[0].mxu1 }
 0x1e9   :  { %v227_v19 = vadd.f32 %v250_v17, %v226_v18  ;;  %v277_v20 = vpop.f32.mrb[1].mxu1 }
 0x1eb   :  { %231 = vst.msk [vmem:[#allocation8] sm:$0xff] %vm230_vm3, %v227_v19 }
 0x1ec   :  { %373 = shalt.err (!%p370_p0)
}
 0x1ed   :  { %s374_s11 = scalar_lea.hbm %s494_s5, 128 }
 0x1ee   :  { %p375_p1 = scmp.ne.s32.totalorder %s494_s5, %s374_s11  ;;  %p378_p2 = scmp.lt.u32.totalorder %s374_s11, %s494_s5 }
 0x1f0   :  { %p380_p3 = pnand %p378_p2, %p375_p1 }
 0x1f2   :  { %383 = shalt.err (!%p380_p3)
}
 0x1f3   :  { %241 = dma.vmem_to_hbm [thread:$0]  %s239_s8, 128, %s494_s5, [#allocation4]  }
 0x1f4   :  { %388 = dma.done.wait [#allocation4], 128  }
 0x1f5   :  { %389 = vsyncadd [#allocation4], 4294967168 }
 0x1f6   :  { %245 = vsyncpa [#allocation3], 1 }
 0x1f7   :  { %246 = vsyncpa [#allocation6], 1 }
 0x1f8   :  { %247 = vsyncpa [#allocation4], 1 }

</bundles_post_ra>
